<compile_context>
chip_gen: v6e
topology: v6e:2x2x1
jax: 0.10.0
libtpu: 0.0.40
codegen_flags: <defaults>
</compile_context>

<pallas_src>
import jax
import jax.numpy as jnp
from jax.experimental import pallas as pl
from jax.experimental.pallas import tpu as pltpu

# Feature sizes of the layers actually used in forward().
LAYER_DIMS = [(4, 8), (8, 16), (16, 32), (32, 64), (64, 128),
              (128, 64), (64, 32), (32, 16), (16, 8), (8, 1)]
NUM_LAYERS = len(LAYER_DIMS)
IN_PAD = 8              # input features (4) padded to one f32 sublane tile
DEFAULT_TILE_B = 1024   # batch tile (lane axis); sweep 512/1024/2048 if desired
TOTAL_MACS = sum(fi * fo for fi, fo in LAYER_DIMS)   # 21_800 real MACs / element


def _round_up(n, m):
    return ((n + m - 1) // m) * m


def mlp_kernel(*refs):
    """Whole 10-layer MLP on one feature-major batch tile.

    refs layout:
      refs[0]              x_ref  : (IN_PAD, TILE_B) f32, rows 0..3 valid
      refs[1 : 1+NL]       w_refs : bf16 weights at true shapes (fout, fin);
                                    layer 1 has fin padded 4->8 (zero cols),
                                    layer 10 stored transposed as (8, 1)
      refs[1+NL : 1+2*NL]  b_refs : f32 biases, (fout, 1)
      refs[-1]             o_ref  : (1, TILE_B) f32 output (lane-dense)
    """
    x_ref = refs[0]
    w_refs = refs[1:1 + NUM_LAYERS]
    b_refs = refs[1 + NUM_LAYERS:1 + 2 * NUM_LAYERS]
    o_ref = refs[-1]

    # bf16 activations between layers; f32 accumulate inside each dot.
    h = x_ref[...].astype(jnp.bfloat16)                       # (8, TILE_B)

    # Layers 1..9: de-padded MXU matmuls at true (fout, fin) sizes.
    for i in range(NUM_LAYERS - 1):
        acc = jnp.dot(w_refs[i][...], h,
                      preferred_element_type=jnp.float32) + b_refs[i][...]
        h = jnp.maximum(acc, 0.0).astype(jnp.bfloat16)        # (fout_i, TILE_B)

    # Layer 10 (8 -> 1): tiny, so do it on the VPU as a broadcast-MAC plus a
    # sublane reduce instead of a 1x8 MXU pass (weight is stored as (8, 1)).
    w_last = w_refs[-1][...].astype(jnp.float32)              # (8, 1)
    out = jnp.sum(w_last * h.astype(jnp.float32), axis=0, keepdims=True)
    o_ref[...] = (out + b_refs[-1][...]).astype(o_ref.dtype)  # (1, TILE_B)


@jax.jit
def angle3_forward(x, weights, biases):
    """x: (B, 4) float32.  Returns (B, 1) float32."""
    B = x.shape[0]
    b128 = _round_up(max(B, 1), 128)
    # Ensure >= 2 "parallel" grid steps once B_pad >= 256 (v7x has 2 TCs);
    # cap the tile so per-step intermediates stay tiny on every generation.
    if b128 >= 256:
        tile_b = min(DEFAULT_TILE_B, _round_up(pl.cdiv(b128, 2), 128))
    else:
        tile_b = b128
    B_pad = _round_up(B, tile_b)
    grid = (B_pad // tile_b,)

    # Narrow feature-major staging array: (8, B_pad), not a (B_pad, 128) slab.
    x_t = jnp.pad(x.astype(jnp.float32).T,
                  ((0, IN_PAD - x.shape[1]), (0, B_pad - B)))

    in_specs = [pl.BlockSpec((IN_PAD, tile_b), lambda i: (0, i))]
    for w in weights:                      # constant, full-array blocks
        in_specs.append(pl.BlockSpec(w.shape, lambda i: (0, 0)))
    for b in biases:
        in_specs.append(pl.BlockSpec(b.shape, lambda i: (0, 0)))

    cost = pl.CostEstimate(
        flops=2 * TOTAL_MACS * B_pad,
        transcendentals=0,
        bytes_accessed=(IN_PAD + 1) * B_pad * 4            # x in + out
        + 2 * TOTAL_MACS                                    # bf16 weights
        + 4 * sum(fo for _, fo in LAYER_DIMS),              # f32 biases
    )

    out_t = pl.pallas_call(
        mlp_kernel,
        out_shape=jax.ShapeDtypeStruct((1, B_pad), jnp.float32),
        grid_spec=pltpu.PrefetchScalarGridSpec(
            num_scalar_prefetch=0,
            grid=grid,
            in_specs=in_specs,
            out_specs=pl.BlockSpec((1, tile_b), lambda i: (0, i)),
        ),
        compiler_params=pltpu.CompilerParams(
            dimension_semantics=("parallel",)),
        cost_estimate=cost,
    )(x_t, *weights, *biases)

    # (1, B_pad) -> (B, 1)
    return out_t[:, :B].T


def init_params(key):
    """Deterministic init mirroring PyTorch's nn.Linear default
    (uniform(-1/sqrt(fan_in), 1/sqrt(fan_in)) for both W and b).
    Weights stored bf16 at (almost) true shapes: layer 1's fin padded 4->8
    (zero columns), layer 10's weight stored transposed as (8, 1)."""
    weights, biases = [], []
    for li, (fin, fout) in enumerate(LAYER_DIMS):
        key, kw, kb = jax.random.split(key, 3)
        bound = 1.0 / (fin ** 0.5)
        w = jax.random.uniform(kw, (fout, fin), jnp.float32, -bound, bound)
        b = jax.random.uniform(kb, (fout,), jnp.float32, -bound, bound)
        if li == 0:
            w_store = jnp.zeros((fout, IN_PAD), jnp.bfloat16).at[:, :fin].set(
                w.astype(jnp.bfloat16))
        elif li == NUM_LAYERS - 1:
            w_store = w.astype(jnp.bfloat16).T               # (8, 1)
        else:
            w_store = w.astype(jnp.bfloat16)                 # (fout, fin)
        weights.append(w_store)
        biases.append(b.reshape(fout, 1))
    return tuple(weights), tuple(biases)


def reference_forward(x, weights, biases):
    """Pure-JAX reference matching the kernel's numerics:
    bf16 weights & bf16-rounded activations for the matmuls, f32 accumulate."""
    h = x.astype(jnp.float32)
    for li, (fin, fout) in enumerate(LAYER_DIMS):
        w = weights[li].astype(jnp.float32)     # bf16 values as f32
        if li == 0:
            w = w[:, :fin]                      # drop padded input columns
        elif li == NUM_LAYERS - 1:
            w = w.T                             # stored transposed (8,1)->(1,8)
        b = biases[li][:, 0]
        hq = h.astype(jnp.bfloat16).astype(jnp.float32)   # match in-kernel cast
        h = hq @ w.T + b
        if li < NUM_LAYERS - 1:
            h = jnp.maximum(h, 0.0)
    return h


if __name__ == "__main__":
    weights, biases = init_params(jax.random.PRNGKey(0))

    key = jax.random.PRNGKey(0)
    _, kx1, kx2 = jax.random.split(key, 3)

    # Small batch (single 128-wide tile, grid = 1).
    x_small = jax.random.normal(kx1, (8, 4), dtype=jnp.float32)
    out_small = jax.block_until_ready(angle3_forward(x_small, weights, biases))
    ref_small = reference_forward(x_small, weights, biases)
    assert out_small.shape == (8, 1), out_small.shape
    assert jnp.allclose(out_small, ref_small, atol=1e-3, rtol=1e-3), (
        "mismatch vs reference (small batch)")

    # Larger batch exercises the >=2-step 'parallel' grid (tile_b = 512).
    x_big = jax.random.normal(kx2, (1000, 4), dtype=jnp.float32)
    out_big = jax.block_until_ready(angle3_forward(x_big, weights, biases))
    ref_big = reference_forward(x_big, weights, biases)
    assert out_big.shape == (1000, 1), out_big.shape
    assert jnp.allclose(out_big, ref_big, atol=1e-3, rtol=1e-3), (
        "mismatch vs reference (large batch)")

    print("KERNEL_OK")
</pallas_src>

<mosaic_0001>
module attributes {stable_mosaic.version = 11 : i64} {
  func.func @mlp_kernel(%arg0: i32, %arg1: memref<8x128xf32, #tpu.memory_space<vmem>>, %arg2: memref<8x8xbf16, #tpu.memory_space<vmem>>, %arg3: memref<16x8xbf16, #tpu.memory_space<vmem>>, %arg4: memref<32x16xbf16, #tpu.memory_space<vmem>>, %arg5: memref<64x32xbf16, #tpu.memory_space<vmem>>, %arg6: memref<128x64xbf16, #tpu.memory_space<vmem>>, %arg7: memref<64x128xbf16, #tpu.memory_space<vmem>>, %arg8: memref<32x64xbf16, #tpu.memory_space<vmem>>, %arg9: memref<16x32xbf16, #tpu.memory_space<vmem>>, %arg10: memref<8x16xbf16, #tpu.memory_space<vmem>>, %arg11: memref<8x1xbf16, #tpu.memory_space<vmem>>, %arg12: memref<8x1xf32, #tpu.memory_space<vmem>>, %arg13: memref<16x1xf32, #tpu.memory_space<vmem>>, %arg14: memref<32x1xf32, #tpu.memory_space<vmem>>, %arg15: memref<64x1xf32, #tpu.memory_space<vmem>>, %arg16: memref<128x1xf32, #tpu.memory_space<vmem>>, %arg17: memref<64x1xf32, #tpu.memory_space<vmem>>, %arg18: memref<32x1xf32, #tpu.memory_space<vmem>>, %arg19: memref<16x1xf32, #tpu.memory_space<vmem>>, %arg20: memref<8x1xf32, #tpu.memory_space<vmem>>, %arg21: memref<1x1xf32, #tpu.memory_space<vmem>>, %arg22: memref<1x128xf32, #tpu.memory_space<vmem>>) attributes {dimension_semantics = [#tpu.dimension_semantics<parallel>], iteration_bounds = array<i64: 1>, scalar_prefetch = 0 : i64, scratch_operands = 0 : i64, tpu.core_type = #tpu.core_type<tc>, window_params = [{transform_indices = @transform_0, window_bounds = array<i64: 8, 128>}, {pipeline_mode = #tpu.pipeline_mode<synchronous>, transform_indices = @transform_1, window_bounds = array<i64: 8, 8>}, {pipeline_mode = #tpu.pipeline_mode<synchronous>, transform_indices = @transform_2, window_bounds = array<i64: 16, 8>}, {pipeline_mode = #tpu.pipeline_mode<synchronous>, transform_indices = @transform_3, window_bounds = array<i64: 32, 16>}, {pipeline_mode = #tpu.pipeline_mode<synchronous>, transform_indices = @transform_4, window_bounds = array<i64: 64, 32>}, {pipeline_mode = #tpu.pipeline_mode<synchronous>, transform_indices = @transform_5, window_bounds = array<i64: 128, 64>}, {pipeline_mode = #tpu.pipeline_mode<synchronous>, transform_indices = @transform_6, window_bounds = array<i64: 64, 128>}, {pipeline_mode = #tpu.pipeline_mode<synchronous>, transform_indices = @transform_7, window_bounds = array<i64: 32, 64>}, {pipeline_mode = #tpu.pipeline_mode<synchronous>, transform_indices = @transform_8, window_bounds = array<i64: 16, 32>}, {pipeline_mode = #tpu.pipeline_mode<synchronous>, transform_indices = @transform_9, window_bounds = array<i64: 8, 16>}, {pipeline_mode = #tpu.pipeline_mode<synchronous>, transform_indices = @transform_10, window_bounds = array<i64: 8, 1>}, {pipeline_mode = #tpu.pipeline_mode<synchronous>, transform_indices = @transform_11, window_bounds = array<i64: 8, 1>}, {pipeline_mode = #tpu.pipeline_mode<synchronous>, transform_indices = @transform_12, window_bounds = array<i64: 16, 1>}, {pipeline_mode = #tpu.pipeline_mode<synchronous>, transform_indices = @transform_13, window_bounds = array<i64: 32, 1>}, {pipeline_mode = #tpu.pipeline_mode<synchronous>, transform_indices = @transform_14, window_bounds = array<i64: 64, 1>}, {pipeline_mode = #tpu.pipeline_mode<synchronous>, transform_indices = @transform_15, window_bounds = array<i64: 128, 1>}, {pipeline_mode = #tpu.pipeline_mode<synchronous>, transform_indices = @transform_16, window_bounds = array<i64: 64, 1>}, {pipeline_mode = #tpu.pipeline_mode<synchronous>, transform_indices = @transform_17, window_bounds = array<i64: 32, 1>}, {pipeline_mode = #tpu.pipeline_mode<synchronous>, transform_indices = @transform_18, window_bounds = array<i64: 16, 1>}, {pipeline_mode = #tpu.pipeline_mode<synchronous>, transform_indices = @transform_19, window_bounds = array<i64: 8, 1>}, {pipeline_mode = #tpu.pipeline_mode<synchronous>, transform_indices = @transform_20, window_bounds = array<i64: 1, 1>}, {transform_indices = @transform_21, window_bounds = array<i64: 1, 128>}]} {
    %c0 = arith.constant 0 : index
    %c0_0 = arith.constant 0 : index
    %0 = vector.load %arg1[%c0, %c0_0] : memref<8x128xf32, #tpu.memory_space<vmem>>, vector<8x128xf32>
    %1 = arith.truncf %0 : vector<8x128xf32> to vector<8x128xbf16>
    %c0_1 = arith.constant 0 : index
    %c0_2 = arith.constant 0 : index
    %2 = vector.load %arg2[%c0_1, %c0_2] : memref<8x8xbf16, #tpu.memory_space<vmem>>, vector<8x8xbf16>
    %cst = arith.constant dense<0.000000e+00> : vector<8x128xf32>
    %3 = tpu.matmul %2, %1, %cst {dimension_numbers = #tpu.dot_dimension_numbers<[1], [0], [0], [1], [0, 0, 1, 1], [], []>} : vector<8x8xbf16>, vector<8x128xbf16>, vector<8x128xf32> -> vector<8x128xf32>
    %c0_3 = arith.constant 0 : index
    %c0_4 = arith.constant 0 : index
    %4 = vector.load %arg12[%c0_3, %c0_4] : memref<8x1xf32, #tpu.memory_space<vmem>>, vector<8x1xf32>
    %5 = vector.broadcast %4 : vector<8x1xf32> to vector<8x128xf32>
    %6 = arith.addf %3, %5 : vector<8x128xf32>
    %cst_5 = arith.constant 0.000000e+00 : f32
    %7 = vector.broadcast %cst_5 : f32 to vector<8x128xf32>
    %8 = arith.maximumf %6, %7 : vector<8x128xf32>
    %9 = arith.truncf %8 : vector<8x128xf32> to vector<8x128xbf16>
    %c0_6 = arith.constant 0 : index
    %c0_7 = arith.constant 0 : index
    %10 = vector.load %arg3[%c0_6, %c0_7] : memref<16x8xbf16, #tpu.memory_space<vmem>>, vector<16x8xbf16>
    %cst_8 = arith.constant dense<0.000000e+00> : vector<16x128xf32>
    %11 = tpu.matmul %10, %9, %cst_8 {dimension_numbers = #tpu.dot_dimension_numbers<[1], [0], [0], [1], [0, 0, 1, 1], [], []>} : vector<16x8xbf16>, vector<8x128xbf16>, vector<16x128xf32> -> vector<16x128xf32>
    %c0_9 = arith.constant 0 : index
    %c0_10 = arith.constant 0 : index
    %12 = vector.load %arg13[%c0_9, %c0_10] : memref<16x1xf32, #tpu.memory_space<vmem>>, vector<16x1xf32>
    %13 = vector.broadcast %12 : vector<16x1xf32> to vector<16x128xf32>
    %14 = arith.addf %11, %13 : vector<16x128xf32>
    %cst_11 = arith.constant 0.000000e+00 : f32
    %15 = vector.broadcast %cst_11 : f32 to vector<16x128xf32>
    %16 = arith.maximumf %14, %15 : vector<16x128xf32>
    %17 = arith.truncf %16 : vector<16x128xf32> to vector<16x128xbf16>
    %c0_12 = arith.constant 0 : index
    %c0_13 = arith.constant 0 : index
    %18 = vector.load %arg4[%c0_12, %c0_13] : memref<32x16xbf16, #tpu.memory_space<vmem>>, vector<32x16xbf16>
    %cst_14 = arith.constant dense<0.000000e+00> : vector<32x128xf32>
    %19 = tpu.matmul %18, %17, %cst_14 {dimension_numbers = #tpu.dot_dimension_numbers<[1], [0], [0], [1], [0, 0, 1, 1], [], []>} : vector<32x16xbf16>, vector<16x128xbf16>, vector<32x128xf32> -> vector<32x128xf32>
    %c0_15 = arith.constant 0 : index
    %c0_16 = arith.constant 0 : index
    %20 = vector.load %arg14[%c0_15, %c0_16] : memref<32x1xf32, #tpu.memory_space<vmem>>, vector<32x1xf32>
    %21 = vector.broadcast %20 : vector<32x1xf32> to vector<32x128xf32>
    %22 = arith.addf %19, %21 : vector<32x128xf32>
    %cst_17 = arith.constant 0.000000e+00 : f32
    %23 = vector.broadcast %cst_17 : f32 to vector<32x128xf32>
    %24 = arith.maximumf %22, %23 : vector<32x128xf32>
    %25 = arith.truncf %24 : vector<32x128xf32> to vector<32x128xbf16>
    %c0_18 = arith.constant 0 : index
    %c0_19 = arith.constant 0 : index
    %26 = vector.load %arg5[%c0_18, %c0_19] : memref<64x32xbf16, #tpu.memory_space<vmem>>, vector<64x32xbf16>
    %cst_20 = arith.constant dense<0.000000e+00> : vector<64x128xf32>
    %27 = tpu.matmul %26, %25, %cst_20 {dimension_numbers = #tpu.dot_dimension_numbers<[1], [0], [0], [1], [0, 0, 1, 1], [], []>} : vector<64x32xbf16>, vector<32x128xbf16>, vector<64x128xf32> -> vector<64x128xf32>
    %c0_21 = arith.constant 0 : index
    %c0_22 = arith.constant 0 : index
    %28 = vector.load %arg15[%c0_21, %c0_22] : memref<64x1xf32, #tpu.memory_space<vmem>>, vector<64x1xf32>
    %29 = vector.broadcast %28 : vector<64x1xf32> to vector<64x128xf32>
    %30 = arith.addf %27, %29 : vector<64x128xf32>
    %cst_23 = arith.constant 0.000000e+00 : f32
    %31 = vector.broadcast %cst_23 : f32 to vector<64x128xf32>
    %32 = arith.maximumf %30, %31 : vector<64x128xf32>
    %33 = arith.truncf %32 : vector<64x128xf32> to vector<64x128xbf16>
    %c0_24 = arith.constant 0 : index
    %c0_25 = arith.constant 0 : index
    %34 = vector.load %arg6[%c0_24, %c0_25] : memref<128x64xbf16, #tpu.memory_space<vmem>>, vector<128x64xbf16>
    %cst_26 = arith.constant dense<0.000000e+00> : vector<128x128xf32>
    %35 = tpu.matmul %34, %33, %cst_26 {dimension_numbers = #tpu.dot_dimension_numbers<[1], [0], [0], [1], [0, 0, 1, 1], [], []>} : vector<128x64xbf16>, vector<64x128xbf16>, vector<128x128xf32> -> vector<128x128xf32>
    %c0_27 = arith.constant 0 : index
    %c0_28 = arith.constant 0 : index
    %36 = vector.load %arg16[%c0_27, %c0_28] : memref<128x1xf32, #tpu.memory_space<vmem>>, vector<128x1xf32>
    %37 = vector.broadcast %36 : vector<128x1xf32> to vector<128x128xf32>
    %38 = arith.addf %35, %37 : vector<128x128xf32>
    %cst_29 = arith.constant 0.000000e+00 : f32
    %39 = vector.broadcast %cst_29 : f32 to vector<128x128xf32>
    %40 = arith.maximumf %38, %39 : vector<128x128xf32>
    %41 = arith.truncf %40 : vector<128x128xf32> to vector<128x128xbf16>
    %c0_30 = arith.constant 0 : index
    %c0_31 = arith.constant 0 : index
    %42 = vector.load %arg7[%c0_30, %c0_31] : memref<64x128xbf16, #tpu.memory_space<vmem>>, vector<64x128xbf16>
    %cst_32 = arith.constant dense<0.000000e+00> : vector<64x128xf32>
    %43 = tpu.matmul %42, %41, %cst_32 {dimension_numbers = #tpu.dot_dimension_numbers<[1], [0], [0], [1], [0, 0, 1, 1], [], []>} : vector<64x128xbf16>, vector<128x128xbf16>, vector<64x128xf32> -> vector<64x128xf32>
    %c0_33 = arith.constant 0 : index
    %c0_34 = arith.constant 0 : index
    %44 = vector.load %arg17[%c0_33, %c0_34] : memref<64x1xf32, #tpu.memory_space<vmem>>, vector<64x1xf32>
    %45 = vector.broadcast %44 : vector<64x1xf32> to vector<64x128xf32>
    %46 = arith.addf %43, %45 : vector<64x128xf32>
    %cst_35 = arith.constant 0.000000e+00 : f32
    %47 = vector.broadcast %cst_35 : f32 to vector<64x128xf32>
    %48 = arith.maximumf %46, %47 : vector<64x128xf32>
    %49 = arith.truncf %48 : vector<64x128xf32> to vector<64x128xbf16>
    %c0_36 = arith.constant 0 : index
    %c0_37 = arith.constant 0 : index
    %50 = vector.load %arg8[%c0_36, %c0_37] : memref<32x64xbf16, #tpu.memory_space<vmem>>, vector<32x64xbf16>
    %cst_38 = arith.constant dense<0.000000e+00> : vector<32x128xf32>
    %51 = tpu.matmul %50, %49, %cst_38 {dimension_numbers = #tpu.dot_dimension_numbers<[1], [0], [0], [1], [0, 0, 1, 1], [], []>} : vector<32x64xbf16>, vector<64x128xbf16>, vector<32x128xf32> -> vector<32x128xf32>
    %c0_39 = arith.constant 0 : index
    %c0_40 = arith.constant 0 : index
    %52 = vector.load %arg18[%c0_39, %c0_40] : memref<32x1xf32, #tpu.memory_space<vmem>>, vector<32x1xf32>
    %53 = vector.broadcast %52 : vector<32x1xf32> to vector<32x128xf32>
    %54 = arith.addf %51, %53 : vector<32x128xf32>
    %cst_41 = arith.constant 0.000000e+00 : f32
    %55 = vector.broadcast %cst_41 : f32 to vector<32x128xf32>
    %56 = arith.maximumf %54, %55 : vector<32x128xf32>
    %57 = arith.truncf %56 : vector<32x128xf32> to vector<32x128xbf16>
    %c0_42 = arith.constant 0 : index
    %c0_43 = arith.constant 0 : index
    %58 = vector.load %arg9[%c0_42, %c0_43] : memref<16x32xbf16, #tpu.memory_space<vmem>>, vector<16x32xbf16>
    %cst_44 = arith.constant dense<0.000000e+00> : vector<16x128xf32>
    %59 = tpu.matmul %58, %57, %cst_44 {dimension_numbers = #tpu.dot_dimension_numbers<[1], [0], [0], [1], [0, 0, 1, 1], [], []>} : vector<16x32xbf16>, vector<32x128xbf16>, vector<16x128xf32> -> vector<16x128xf32>
    %c0_45 = arith.constant 0 : index
    %c0_46 = arith.constant 0 : index
    %60 = vector.load %arg19[%c0_45, %c0_46] : memref<16x1xf32, #tpu.memory_space<vmem>>, vector<16x1xf32>
    %61 = vector.broadcast %60 : vector<16x1xf32> to vector<16x128xf32>
    %62 = arith.addf %59, %61 : vector<16x128xf32>
    %cst_47 = arith.constant 0.000000e+00 : f32
    %63 = vector.broadcast %cst_47 : f32 to vector<16x128xf32>
    %64 = arith.maximumf %62, %63 : vector<16x128xf32>
    %65 = arith.truncf %64 : vector<16x128xf32> to vector<16x128xbf16>
    %c0_48 = arith.constant 0 : index
    %c0_49 = arith.constant 0 : index
    %66 = vector.load %arg10[%c0_48, %c0_49] : memref<8x16xbf16, #tpu.memory_space<vmem>>, vector<8x16xbf16>
    %cst_50 = arith.constant dense<0.000000e+00> : vector<8x128xf32>
    %67 = tpu.matmul %66, %65, %cst_50 {dimension_numbers = #tpu.dot_dimension_numbers<[1], [0], [0], [1], [0, 0, 1, 1], [], []>} : vector<8x16xbf16>, vector<16x128xbf16>, vector<8x128xf32> -> vector<8x128xf32>
    %c0_51 = arith.constant 0 : index
    %c0_52 = arith.constant 0 : index
    %68 = vector.load %arg20[%c0_51, %c0_52] : memref<8x1xf32, #tpu.memory_space<vmem>>, vector<8x1xf32>
    %69 = vector.broadcast %68 : vector<8x1xf32> to vector<8x128xf32>
    %70 = arith.addf %67, %69 : vector<8x128xf32>
    %cst_53 = arith.constant 0.000000e+00 : f32
    %71 = vector.broadcast %cst_53 : f32 to vector<8x128xf32>
    %72 = arith.maximumf %70, %71 : vector<8x128xf32>
    %73 = arith.truncf %72 : vector<8x128xf32> to vector<8x128xbf16>
    %c0_54 = arith.constant 0 : index
    %c0_55 = arith.constant 0 : index
    %74 = vector.load %arg11[%c0_54, %c0_55] : memref<8x1xbf16, #tpu.memory_space<vmem>>, vector<8x1xbf16>
    %75 = arith.extf %74 : vector<8x1xbf16> to vector<8x1xf32>
    %76 = arith.extf %73 : vector<8x128xbf16> to vector<8x128xf32>
    %77 = vector.broadcast %75 : vector<8x1xf32> to vector<8x128xf32>
    %78 = arith.mulf %77, %76 : vector<8x128xf32>
    %cst_56 = arith.constant dense<0.000000e+00> : vector<128xf32>
    %79 = vector.multi_reduction <add>, %78, %cst_56 [0] : vector<8x128xf32> to vector<128xf32>
    %80 = vector.shape_cast %79 : vector<128xf32> to vector<1x128xf32>
    %c0_57 = arith.constant 0 : index
    %c0_58 = arith.constant 0 : index
    %81 = vector.load %arg21[%c0_57, %c0_58] : memref<1x1xf32, #tpu.memory_space<vmem>>, vector<1x1xf32>
    %82 = vector.broadcast %81 : vector<1x1xf32> to vector<1x128xf32>
    %83 = arith.addf %80, %82 : vector<1x128xf32>
    %c0_59 = arith.constant 0 : index
    %c0_60 = arith.constant 0 : index
    %84 = vector.load %arg22[%c0_59, %c0_60] : memref<1x128xf32, #tpu.memory_space<vmem>>, vector<1x128xf32>
    tpu.vector_store %arg22[%c0_59, %c0_60], %83 {strides = array<i32>} : memref<1x128xf32, #tpu.memory_space<vmem>>, vector<1x128xf32>,
    return
  }
  func.func @transform_0(%arg0: i32) -> (i32, i32) {
    %c0_i32 = arith.constant 0 : i32
    %c0_i32_0 = arith.constant 0 : i32
    return %c0_i32, %arg0 : i32, i32
  }
  func.func @transform_1(%arg0: i32) -> (i32, i32) {
    %c0_i32 = arith.constant 0 : i32
    %c0_i32_0 = arith.constant 0 : i32
    %c0_i32_1 = arith.constant 0 : i32
    return %c0_i32, %c0_i32_0 : i32, i32
  }
  func.func @transform_2(%arg0: i32) -> (i32, i32) {
    %c0_i32 = arith.constant 0 : i32
    %c0_i32_0 = arith.constant 0 : i32
    %c0_i32_1 = arith.constant 0 : i32
    return %c0_i32, %c0_i32_0 : i32, i32
  }
  func.func @transform_3(%arg0: i32) -> (i32, i32) {
    %c0_i32 = arith.constant 0 : i32
    %c0_i32_0 = arith.constant 0 : i32
    %c0_i32_1 = arith.constant 0 : i32
    return %c0_i32, %c0_i32_0 : i32, i32
  }
  func.func @transform_4(%arg0: i32) -> (i32, i32) {
    %c0_i32 = arith.constant 0 : i32
    %c0_i32_0 = arith.constant 0 : i32
    %c0_i32_1 = arith.constant 0 : i32
    return %c0_i32, %c0_i32_0 : i32, i32
  }
  func.func @transform_5(%arg0: i32) -> (i32, i32) {
    %c0_i32 = arith.constant 0 : i32
    %c0_i32_0 = arith.constant 0 : i32
    %c0_i32_1 = arith.constant 0 : i32
    return %c0_i32, %c0_i32_0 : i32, i32
  }
  func.func @transform_6(%arg0: i32) -> (i32, i32) {
    %c0_i32 = arith.constant 0 : i32
    %c0_i32_0 = arith.constant 0 : i32
    %c0_i32_1 = arith.constant 0 : i32
    return %c0_i32, %c0_i32_0 : i32, i32
  }
  func.func @transform_7(%arg0: i32) -> (i32, i32) {
    %c0_i32 = arith.constant 0 : i32
    %c0_i32_0 = arith.constant 0 : i32
    %c0_i32_1 = arith.constant 0 : i32
    return %c0_i32, %c0_i32_0 : i32, i32
  }
  func.func @transform_8(%arg0: i32) -> (i32, i32) {
    %c0_i32 = arith.constant 0 : i32
    %c0_i32_0 = arith.constant 0 : i32
    %c0_i32_1 = arith.constant 0 : i32
    return %c0_i32, %c0_i32_0 : i32, i32
  }
  func.func @transform_9(%arg0: i32) -> (i32, i32) {
    %c0_i32 = arith.constant 0 : i32
    %c0_i32_0 = arith.constant 0 : i32
    %c0_i32_1 = arith.constant 0 : i32
    return %c0_i32, %c0_i32_0 : i32, i32
  }
  func.func @transform_10(%arg0: i32) -> (i32, i32) {
    %c0_i32 = arith.constant 0 : i32
    %c0_i32_0 = arith.constant 0 : i32
    %c0_i32_1 = arith.constant 0 : i32
    return %c0_i32, %c0_i32_0 : i32, i32
  }
  func.func @transform_11(%arg0: i32) -> (i32, i32) {
    %c0_i32 = arith.constant 0 : i32
    %c0_i32_0 = arith.constant 0 : i32
    %c0_i32_1 = arith.constant 0 : i32
    return %c0_i32, %c0_i32_0 : i32, i32
  }
  func.func @transform_12(%arg0: i32) -> (i32, i32) {
    %c0_i32 = arith.constant 0 : i32
    %c0_i32_0 = arith.constant 0 : i32
    %c0_i32_1 = arith.constant 0 : i32
    return %c0_i32, %c0_i32_0 : i32, i32
  }
  func.func @transform_13(%arg0: i32) -> (i32, i32) {
    %c0_i32 = arith.constant 0 : i32
    %c0_i32_0 = arith.constant 0 : i32
    %c0_i32_1 = arith.constant 0 : i32
    return %c0_i32, %c0_i32_0 : i32, i32
  }
  func.func @transform_14(%arg0: i32) -> (i32, i32) {
    %c0_i32 = arith.constant 0 : i32
    %c0_i32_0 = arith.constant 0 : i32
    %c0_i32_1 = arith.constant 0 : i32
    return %c0_i32, %c0_i32_0 : i32, i32
  }
  func.func @transform_15(%arg0: i32) -> (i32, i32) {
    %c0_i32 = arith.constant 0 : i32
    %c0_i32_0 = arith.constant 0 : i32
    %c0_i32_1 = arith.constant 0 : i32
    return %c0_i32, %c0_i32_0 : i32, i32
  }
  func.func @transform_16(%arg0: i32) -> (i32, i32) {
    %c0_i32 = arith.constant 0 : i32
    %c0_i32_0 = arith.constant 0 : i32
    %c0_i32_1 = arith.constant 0 : i32
    return %c0_i32, %c0_i32_0 : i32, i32
  }
  func.func @transform_17(%arg0: i32) -> (i32, i32) {
    %c0_i32 = arith.constant 0 : i32
    %c0_i32_0 = arith.constant 0 : i32
    %c0_i32_1 = arith.constant 0 : i32
    return %c0_i32, %c0_i32_0 : i32, i32
  }
  func.func @transform_18(%arg0: i32) -> (i32, i32) {
    %c0_i32 = arith.constant 0 : i32
    %c0_i32_0 = arith.constant 0 : i32
    %c0_i32_1 = arith.constant 0 : i32
    return %c0_i32, %c0_i32_0 : i32, i32
  }
  func.func @transform_19(%arg0: i32) -> (i32, i32) {
    %c0_i32 = arith.constant 0 : i32
    %c0_i32_0 = arith.constant 0 : i32
    %c0_i32_1 = arith.constant 0 : i32
    return %c0_i32, %c0_i32_0 : i32, i32
  }
  func.func @transform_20(%arg0: i32) -> (i32, i32) {
    %c0_i32 = arith.constant 0 : i32
    %c0_i32_0 = arith.constant 0 : i32
    %c0_i32_1 = arith.constant 0 : i32
    return %c0_i32, %c0_i32_0 : i32, i32
  }
  func.func @transform_21(%arg0: i32) -> (i32, i32) {
    %c0_i32 = arith.constant 0 : i32
    %c0_i32_0 = arith.constant 0 : i32
    return %c0_i32, %arg0 : i32, i32
  }
}

</mosaic_0001>

<bundles_post_ra>
// kernel: angle3_forward.1
= control target key start
LH: loop header
LB: loop body
LE: loop exit
PB: predicated region body
PF: predicated region fallthrough
CT: control target
= control target key end

     0   :  { %v1389_v0 = vmov 0   ;;  %v1390_v2 = vmov 0.0   ;;  %vm84_vm0 = vcmask 1043456   ;;  %vm1391_vm1 = vmmov 0   ;;  %s1768_s11 = inlined_call_operand.vmem [shape: f32[8,1], index: 11, kind: input, shape index: {}]   ;;  %s1769_s0 = inlined_call_operand.vmem [shape: f32[8,128], index: 0, kind: input, shape index: {}]   ;;  %s1770_s12 = inlined_call_operand.vmem [shape: f32[16,1], index: 12, kind: input, shape index: {}]   ;;  %s1771_s1 = inlined_call_operand.vmem [shape: bf16[8,8], index: 1, kind: input, shape index: {}]   ;;  %s1772_s13 = inlined_call_operand.vmem [shape: f32[32,1], index: 13, kind: input, shape index: {}]   ;;  %s1773_s14 = inlined_call_operand.vmem [shape: f32[64,1], index: 14, kind: input, shape index: {}]   ;;  %s1774_s15 = inlined_call_operand.vmem [shape: f32[128,1], index: 15, kind: input, shape index: {}]   ;;  %s1775_s16 = inlined_call_operand.vmem [shape: f32[64,1], index: 16, kind: input, shape index: {}]   ;;  %s1776_s17 = inlined_call_operand.vmem [shape: f32[32,1], index: 17, kind: input, shape index: {}]   ;;  %s1777_s2 = inlined_call_operand.vmem [shape: bf16[16,8], index: 2, kind: input, shape index: {}]   ;;  %s1778_s18 = inlined_call_operand.vmem [shape: f32[16,1], index: 18, kind: input, shape index: {}]   ;;  %s1779_s10 = inlined_call_operand.vmem [shape: bf16[8,1], index: 10, kind: input, shape index: {}]   ;;  %s1780_s20 = inlined_call_operand.<no memory space> [shape: f32[1,1], index: 20, kind: input, shape index: {}]   ;;  %s1781_s19 = inlined_call_operand.vmem [shape: f32[8,1], index: 19, kind: input, shape index: {}]   ;;  %s1782_s3 = inlined_call_operand.vmem [shape: bf16[32,16], index: 3, kind: input, shape index: {}]   ;;  %s1783_s4 = inlined_call_operand.vmem [shape: bf16[64,32], index: 4, kind: input, shape index: {}]   ;;  %s1784_s5 = inlined_call_operand.vmem [shape: bf16[128,64], index: 5, kind: input, shape index: {}]   ;;  %s1785_s6 = inlined_call_operand.vmem [shape: bf16[64,128], index: 6, kind: input, shape index: {}]   ;;  %s1786_s7 = inlined_call_operand.vmem [shape: bf16[32,64], index: 7, kind: input, shape index: {}]   ;;  %s1787_s8 = inlined_call_operand.vmem [shape: bf16[16,32], index: 8, kind: input, shape index: {}]   ;;  %s1788_s9 = inlined_call_operand.vmem [shape: bf16[8,16], index: 9, kind: input, shape index: {}]   ;;  %s1789_s21 = inlined_call_operand.vmem [shape: f32[1,128], index: 21, kind: output, shape index: {}]  }
   0x1   :  { %1793 = sst [smem:[#allocation3_spill]] %s1768_s11  ;;  %1365 = vset.pattern.permute.xlu0 %v1389_v0  ;;  %1258 = vmatprep.subr.bf16.mxu0 %v1390_v2  ;;  %vm80_vm2 = vcmask 64512   ;;  %v496_v14 = vld [vmem:[%s1774_s15 + $0x78] sm:$0xff]  ;;  %v494_v15 = vld [vmem:[%s1774_s15 + $0x68] sm:$0xff]  ;;  %v1137_v36 = vld [vmem:[%s1779_s10] sm:$0xf]  ;;  %v26_v39 = vstv %s1780_s20 }
   0x2   :  { %1794 = sst [smem:[#allocation4_spill]] %s1769_s0  ;;  %1260 = vmatprep.mubr.msk.bf16.mxu0 %vm1391_vm1, %v1390_v2  ;;  %1366 = vset.pattern.permute.xlu1 %v1389_v0  ;;  %v492_v16 = vld [vmem:[%s1774_s15 + $0x58] sm:$0xff]  ;;  %v490_v17 = vld [vmem:[%s1774_s15 + $0x48] sm:$0xff]  ;;  %v495_v37 = vld [vmem:[%s1774_s15 + $0x70] sm:$0xff]  ;;  %v1138_v38 = vunpack.c.l.bf16 %v1137_v36  ;;  %27 = vst [vmem:[#allocation2] sm:$0x1] %v26_v39 }
   0x3   :  { %1795 = sst [smem:[#allocation5_spill]] %s1770_s12  ;;  %1264 = vmatprep.subr.bf16.mxu1 %v1390_v2  ;;  %1266 = vmatprep.mubr.msk.bf16.mxu1 %vm1391_vm1, %v1390_v2  ;;  %v488_v18 = vld [vmem:[%s1774_s15 + $0x38] sm:$0xff]  ;;  %v486_v19 = vld [vmem:[%s1774_s15 + $0x28] sm:$0xff]  ;;  %v493_v40 = vld [vmem:[%s1774_s15 + $0x60] sm:$0xff]  ;;  %vm237_vm3 = vcmask 130048   ;;  %vm375_vm4 = vcmask 261120  }
   0x4   :  { %1796 = sst [smem:[#allocation6_spill]] %s1771_s1  ;;  %v484_v20 = vld [vmem:[%s1774_s15 + $0x18] sm:$0xff]  ;;  %v482_v21 = vld [vmem:[%s1774_s15 + $0x8] sm:$0xff]  ;;  %v491_v41 = vld [vmem:[%s1774_s15 + $0x50] sm:$0xff]  ;;  %vm617_vm5 = vcmask 523264  }
   0x5   :  { %1797 = sst [smem:[#allocation7_spill]] %s1772_s13  ;;  %v778_v23 = vld [vmem:[%s1775_s16 + $0x38] sm:$0xff]  ;;  %v776_v25 = vld [vmem:[%s1775_s16 + $0x28] sm:$0xff]  ;;  %v489_v42 = vld [vmem:[%s1774_s15 + $0x40] sm:$0xff] }
   0x6   :  { %1798 = sst [smem:[#allocation8_spill]] %s1773_s14  ;;  %v774_v27 = vld [vmem:[%s1775_s16 + $0x18] sm:$0xff]  ;;  %v772_v28 = vld [vmem:[%s1775_s16 + $0x8] sm:$0xff]  ;;  %v487_v43 = vld [vmem:[%s1774_s15 + $0x30] sm:$0xff] }
   0x7   :  { %s1799_s26 = sld [smem:[#allocation3_spill]]  ;;  %v927_v31 = vld [vmem:[%s1776_s17 + $0x18] sm:$0xff]  ;;  %v925_v32 = vld [vmem:[%s1776_s17 + $0x8] sm:$0xff]  ;;  %v485_v44 = vld [vmem:[%s1774_s15 + $0x20] sm:$0xff] }
   0x8   :  { %s1800_s28 = sld [smem:[#allocation4_spill]]  ;;  %v1022_v35 = vld [vmem:[%s1778_s18 + $0x8] sm:$0xff]  ;;  %v483_v45 = vld [vmem:[%s1774_s15 + $0x10] sm:$0xff]  ;;  %v481_v46 = vld [vmem:[%s1774_s15] sm:$0xff] }
   0x9   :  { %s1801_s13 = sld [smem:[#allocation5_spill]]  ;;  %v777_v47 = vld [vmem:[%s1775_s16 + $0x30] sm:$0xff]  ;;  %v775_v48 = vld [vmem:[%s1775_s16 + $0x20] sm:$0xff] }
   0xa   :  { %s1802_s22 = sld [smem:[#allocation6_spill]]  ;;  %v773_v49 = vld [vmem:[%s1775_s16 + $0x10] sm:$0xff]  ;;  %v771_v50 = vld [vmem:[%s1775_s16] sm:$0xff] }
   0xb   :  { %s1803_s24 = sld [smem:[#allocation7_spill]]  ;;  %v926_v51 = vld [vmem:[%s1776_s17 + $0x10] sm:$0xff]  ;;  %v924_v52 = vld [vmem:[%s1776_s17] sm:$0xff] }
   0xc   :  { %s1804_s1 = sld [smem:[#allocation8_spill]]  ;;  %v1021_v53 = vld [vmem:[%s1778_s18] sm:$0xff]  ;;  %v1372_v36 = vld [vmem:[%s1783_s4 + $0x10] sm:$0xff]  }
   0xd   :  { %v74_v1 = vld [vmem:[%s1799_s26] sm:$0xff] }
   0xe   :  { %v71_v3 = vld [vmem:[%s1800_s28] sm:$0xff]  ;;  %77 = vperm.xlu0 %1365, %v74_v1  }
   0xf   :  { %v72_v4 = vpack.c.bf16 %v71_v3, %v71_v3  ;;  %v132_v5 = vld [vmem:[%s1801_s13] sm:$0xff]  ;;  %v133_v22 = vld [vmem:[%s1801_s13 + $0x8] sm:$0xff] }
  0x10   :  { %v73_v7 = vld [vmem:[%s1802_s22] sm:$0xf]  ;;  %141 = vperm.xlu1 %1366, %v133_v22  }
  0x11   :  { %v86_v6 = vsel %vm84_vm0, %v72_v4, 0  ;;  %v206_v8 = vld [vmem:[%s1803_s24 + $0x18] sm:$0xff]  ;;  %v204_v9 = vld [vmem:[%s1803_s24 + $0x8] sm:$0xff]  ;;  %v205_v24 = vld [vmem:[%s1803_s24 + $0x10] sm:$0xff] }
  0x12   :  { %1259 = vmatpush3.bf16.msra.mxu0 %v86_v6  ;;  %136 = vperm.xlu0 %1365, %v132_v5   ;;  %v314_v10 = vld [vmem:[%s1804_s1 + $0x38] sm:$0xff]  ;;  %v312_v11 = vld [vmem:[%s1804_s1 + $0x28] sm:$0xff]  ;;  %v203_v26 = vld [vmem:[%s1803_s24] sm:$0xff] }
  0x13   :  { %v310_v12 = vld [vmem:[%s1804_s1 + $0x18] sm:$0xff]  ;;  %v308_v13 = vld [vmem:[%s1804_s1 + $0x8] sm:$0xff]  ;;  %v313_v29 = vld [vmem:[%s1804_s1 + $0x30] sm:$0xff] }
  0x14   :  { %219 = vperm.xlu1 %1366, %v205_v24   ;;  %v311_v30 = vld [vmem:[%s1804_s1 + $0x20] sm:$0xff]  ;;  %v309_v33 = vld [vmem:[%s1804_s1 + $0x10] sm:$0xff] }
  0x15   :  { %1261 = vmatmul.mubr.msk.bf16.vlgmr.msra.gmra.mxu0 %vm80_vm2, %v73_v7  ;;  %v307_v34 = vld [vmem:[%s1804_s1] sm:$0xff] }
  0x16   :  { %224 = vperm.xlu0 %1365, %v206_v8   ;;  %v1086_v54 = vld [vmem:[%s1781_s19] sm:$0xff] }
  0x17   :  { %v1152_v55 = vld [vmem:[#allocation2] sm:$0x1] }
  0x18   :  { %209 = vperm.xlu1 %1366, %v203_v26   ;;  %v1367_v1 = vld [vmem:[%s1777_s2] sm:$0xff]  }
  0x19   :  { %v1368_v3 = vld [vmem:[%s1782_s3] sm:$0xff]  }
  0x1a   :  { %214 = vperm.xlu0 %1365, %v204_v9   ;;  %1272 = vmatprep.mubr.msk.bf16.mxu0 %vm237_vm3, %v1368_v3 }
  0x1c   :  { %347 = vperm.xlu1 %1366, %v313_v29  }
  0x1e   :  { %352 = vperm.xlu0 %1365, %v314_v10  }
  0x20   :  { %337 = vperm.xlu1 %1366, %v311_v30  }
  0x22   :  { %342 = vperm.xlu0 %1365, %v312_v11  }
  0x24   :  { %327 = vperm.xlu1 %1366, %v309_v33  }
  0x26   :  { %332 = vperm.xlu0 %1365, %v310_v12  }
  0x28   :  { %317 = vperm.xlu1 %1366, %v307_v34  }
  0x2a   :  { %322 = vperm.xlu0 %1365, %v308_v13  }
  0x2c   :  { %569 = vperm.xlu1 %1366, %v495_v37   ;;  %v1373_v37 = vld [vmem:[%s1783_s4 + $0x18] sm:$0xff]  }
  0x2e   :  { %574 = vperm.xlu0 %1365, %v496_v14  }
  0x30   :  { %559 = vperm.xlu1 %1366, %v493_v40  }
  0x32   :  { %564 = vperm.xlu0 %1365, %v494_v15   ;;  %v1369_v15 = vld [vmem:[%s1782_s3 + $0x8] sm:$0xff]  }
  0x34   :  { %549 = vperm.xlu1 %1366, %v491_v41  }
  0x36   :  { %554 = vperm.xlu0 %1365, %v492_v16   ;;  %v1370_v16 = vld [vmem:[%s1783_s4] sm:$0xff]  }
  0x38   :  { %539 = vperm.xlu1 %1366, %v489_v42  }
  0x3a   :  { %544 = vperm.xlu0 %1365, %v490_v17  }
  0x3c   :  { %529 = vperm.xlu1 %1366, %v487_v43  }
  0x3e   :  { %534 = vperm.xlu0 %1365, %v488_v18  }
  0x40   :  { %519 = vperm.xlu1 %1366, %v485_v44  }
  0x42   :  { %524 = vperm.xlu0 %1365, %v486_v19  }
  0x44   :  { %509 = vperm.xlu1 %1366, %v483_v45  }
  0x46   :  { %514 = vperm.xlu0 %1365, %v484_v20  }
  0x48   :  { %499 = vperm.xlu1 %1366, %v481_v46  }
  0x4a   :  { %504 = vperm.xlu0 %1365, %v482_v21  }
  0x4c   :  { %811 = vperm.xlu1 %1366, %v777_v47  }
  0x4e   :  { %816 = vperm.xlu0 %1365, %v778_v23  }
  0x50   :  { %801 = vperm.xlu1 %1366, %v775_v48  }
  0x52   :  { %806 = vperm.xlu0 %1365, %v776_v25  }
  0x54   :  { %791 = vperm.xlu1 %1366, %v773_v49  }
  0x56   :  { %796 = vperm.xlu0 %1365, %v774_v27  }
  0x58   :  { %781 = vperm.xlu1 %1366, %v771_v50  }
  0x5a   :  { %786 = vperm.xlu0 %1365, %v772_v28  }
  0x5c   :  { %940 = vperm.xlu1 %1366, %v926_v51  }
  0x5e   :  { %945 = vperm.xlu0 %1365, %v927_v31  }
  0x60   :  { %930 = vperm.xlu1 %1366, %v924_v52  }
  0x62   :  { %935 = vperm.xlu0 %1365, %v925_v32  }
  0x64   :  { %1025 = vperm.xlu1 %1366, %v1021_v53  }
  0x66   :  { %1030 = vperm.xlu0 %1365, %v1022_v35   ;;  %v1371_v35 = vld [vmem:[%s1783_s4 + $0x8] sm:$0xff]  }
  0x68   :  { %1089 = vperm.xlu1 %1366, %v1086_v54  }
  0x6a   :  { %1142 = vperm.xlu0 %1365, %v1138_v38   ;;  %v1374_v38 = vld [vmem:[%s1784_s5] sm:$0xff]  }
  0x6c   :  { %1155 = vperm.xlu1 %1366, %v1152_v55  }
  0x89   :  { %v78_v56 = vpop.permute.xlu0 %77 }
  0x8b   :  { %v142_v8 = vpop.permute.xlu1 %141 }
  0x8d   :  { %v137_v5 = vpop.permute.xlu0 %136 }
  0x8f   :  { %v220_v17 = vpop.permute.xlu1 %219 }
  0x91   :  { %v225_v18 = vpop.permute.xlu0 %224 }
  0x93   :  { %v210_v22 = vpop.permute.xlu1 %209 }
  0x95   :  { %v215_v26 = vpop.permute.xlu0 %214 }
  0x97   :  { %v348_v41 = vpop.permute.xlu1 %347 }
  0x99   :  { %v353_v39 = vpop.permute.xlu0 %352 }
  0x9b   :  { %v338_v46 = vpop.permute.xlu1 %337 }
  0x9d   :  { %v343_v44 = vpop.permute.xlu0 %342 }
  0x9f   :  { %v328_v54 = vpop.permute.xlu1 %327 }
  0xa1   :  { %v333_v50 = vpop.permute.xlu0 %332 }
  0xd5   :  { %v122_v57 = vpop.f32.mrf.mxu0 }
  0xd6   :  { %v123_v58 = vadd.f32 %v122_v57, %v78_v56 }
  0xd7   :  { %v1262_v59 = vpop.f32.mrf.mxu0 }
  0xd8   :  { %v128_v60 = vmax.f32 %v123_v58, 0.0 }
  0xd9   :  { %v125_v61 = vpop.f32.mrf.mxu0 }
  0xda   :  { %v129_v62 = vpack.c.bf16 %v128_v60, %v128_v60 }
  0xdb   :  { %v1263_v63 = vpop.f32.mrf.mxu0 }
  0xdc   :  { %v153_v0 = vsel %vm84_vm0, %v129_v62, 0 }
  0xdd   :  { %1265 = vmatpush3.bf16.msra.mxu1 %v153_v0  ;;  %v323_v0 = vpop.permute.xlu0 %322 }
  0xe0   :  { %1267 = vmatmul.mubr.msk.bf16.vlgmr.msra.gmra.mxu1 %vm80_vm2, %v1367_v1 }
  0xe1   :  { %1280 = vmatprep.mubr.msk.bf16.mxu1 %vm375_vm4, %v1370_v16  ;;  %v1379_v16 = vld [vmem:[%s1784_s5 + $0x28] sm:$0xff]  }
 0x1a0   :  { %v189_v4 = vpop.f32.mrf.mxu1 }
 0x1a1   :  { %v190_v7 = vadd.f32 %v189_v4, %v137_v5  ;;  %v318_v5 = vpop.permute.xlu1 %317 }
 0x1a2   :  { %v1268_v6 = vpop.f32.mrf.mxu1 }
 0x1a3   :  { %v196_v12 = vmax.f32 %v190_v7, 0.0 }
 0x1a4   :  { %v192_v9 = vpop.f32.mrf.mxu1 }
 0x1a5   :  { %v193_v10 = vadd.f32 %v192_v9, %v142_v8 }
 0x1a6   :  { %v1269_v11 = vpop.f32.mrf.mxu1 }
 0x1a7   :  { %v197_v13 = vmax.f32 %v193_v10, 0.0 }
 0x1a9   :  { %v198_v14 = vpack.c.bf16 %v197_v13, %v196_v12  ;;  %v1375_v12 = vld [vmem:[%s1784_s5 + $0x8] sm:$0xff]   ;;  %v1376_v13 = vld [vmem:[%s1784_s5 + $0x10] sm:$0xff]  }
 0x1ab   :  { %1270 = vmatprep.subr.bf16.mxu0 %v198_v14 }
 0x1ac   :  { %1271 = vmatpush3.bf16.msra.mxu0 %v198_v14  ;;  %v1377_v14 = vld [vmem:[%s1784_s5 + $0x18] sm:$0xff]  }
 0x1af   :  { %1273 = vmatmul.mubr.msk.bf16.vlgmr.msra.gmra.mxu0 %vm237_vm3, %v1369_v15  ;;  %v1378_v15 = vld [vmem:[%s1784_s5 + $0x20] sm:$0xff]  }
 0x1b0   :  { %1296 = vmatprep.mubr.msk.bf16.mxu0 %vm617_vm5, %v1374_v38 }
 0x26f   :  { %v1274_v19 = vpop.f32.mrf.mxu0 }
 0x270   :  { %v287_v21 = vadd.f32 %v1274_v19, %v220_v17  ;;  %v1380_v17 = vld [vmem:[%s1784_s5 + $0x30] sm:$0xff]   ;;  %v1382_v19 = vld [vmem:[%s1785_s6] sm:$0xff]  }
 0x271   :  { %v278_v20 = vpop.f32.mrf.mxu0 }
 0x272   :  { %v279_v24 = vadd.f32 %v278_v20, %v210_v22  ;;  %v295_v28 = vmax.f32 %v287_v21, 0.0 }
 0x273   :  { %v1275_v23 = vpop.f32.mrf.mxu0 }
 0x274   :  { %v290_v25 = vadd.f32 %v1275_v23, %v225_v18  ;;  %v293_v31 = vmax.f32 %v279_v24, 0.0  ;;  %v1381_v18 = vld [vmem:[%s1784_s5 + $0x38] sm:$0xff]   ;;  %v575_v24 = vpop.permute.xlu0 %574 }
 0x275   :  { %v281_v27 = vpop.f32.mrf.mxu0 }
 0x276   :  { %v296_v29 = vmax.f32 %v290_v25, 0.0  ;;  %v282_v30 = vadd.f32 %v281_v27, %v215_v26  ;;  %v570_v26 = vpop.permute.xlu1 %569 }
 0x278   :  { %v298_v32 = vpack.c.bf16 %v296_v29, %v295_v28  ;;  %v294_v33 = vmax.f32 %v282_v30, 0.0  ;;  %v565_v29 = vpop.permute.xlu0 %564 }
 0x27a   :  { %v297_v34 = vpack.c.bf16 %v294_v33, %v293_v31  ;;  %1276 = vmatprep.subr.bf16.mxu1 %v298_v32  ;;  %v560_v31 = vpop.permute.xlu1 %559 }
 0x27b   :  { %1277 = vmatpush3.bf16.msra.mxu1 %v298_v32 }
 0x27c   :  { %1278 = vmatprep.subr.bf16.mxu1 %v297_v34 }
 0x27f   :  { %1279 = vmatpush3.bf16.msra.mxu1 %v297_v34  ;;  %v555_v34 = vpop.permute.xlu0 %554 }
 0x282   :  { %1281 = vmatmul.mubr.msk.bf16.vlgmr.msra.gmra.mxu1 %vm375_vm4, %v1371_v35 }
 0x283   :  { %1284 = vmatprep.mubr.msk.bf16.mxu1 %vm375_vm4, %v1372_v36  ;;  %v550_v36 = vpop.permute.xlu1 %549 }
 0x28a   :  { %1285 = vmatmul.mubr.msk.bf16.gmra.mxu1 %vm375_vm4, %v1373_v37 }
 0x28b   :  { %1328 = vmatprep.mubr.bf16.mxu1 %v1382_v19 }
 0x342   :  { %v1282_v40 = vpop.f32.mrf.mxu1 }
 0x343   :  { %v431_v60 = vadd.f32 %v1282_v40, %v328_v54 }
 0x344   :  { %v422_v42 = vpop.f32.mrf.mxu1 }
 0x345   :  { %v455_v6 = vmax.f32 %v431_v60, 0.0  ;;  %v423_v7 = vadd.f32 %v422_v42, %v318_v5  ;;  %v540_v42 = vpop.permute.xlu1 %539 }
 0x346   :  { %v1283_v43 = vpop.f32.mrf.mxu1 }
 0x347   :  { %v434_v56 = vadd.f32 %v1283_v43, %v333_v50  ;;  %v453_v10 = vmax.f32 %v423_v7, 0.0 }
 0x348   :  { %v425_v45 = vpop.f32.mrf.mxu1 }
 0x349   :  { %v456_v1 = vmax.f32 %v434_v56, 0.0  ;;  %v426_v3 = vadd.f32 %v425_v45, %v323_v0  ;;  %v530_v56 = vpop.permute.xlu1 %529 }
 0x34a   :  { %v1286_v47 = vpop.f32.mrf.mxu1 }
 0x34b   :  { %v447_v49 = vadd.f32 %v1286_v47, %v348_v41  ;;  %v462_v8 = vpack.c.bf16 %v456_v1, %v455_v6  ;;  %v454_v9 = vmax.f32 %v426_v3, 0.0 }
 0x34c   :  { %v438_v48 = vpop.f32.mrf.mxu1 }
 0x34d   :  { %v439_v52 = vadd.f32 %v438_v48, %v338_v46  ;;  %v459_v57 = vmax.f32 %v447_v49, 0.0  ;;  %v461_v11 = vpack.c.bf16 %v454_v9, %v453_v10  ;;  %v520_v3 = vpop.permute.xlu1 %519 }
 0x34e   :  { %v1287_v51 = vpop.f32.mrf.mxu1 }
 0x34f   :  { %v450_v53 = vadd.f32 %v1287_v51, %v353_v39  ;;  %v457_v61 = vmax.f32 %v439_v52, 0.0  ;;  %v545_v39 = vpop.permute.xlu0 %544 }
 0x350   :  { %v441_v55 = vpop.f32.mrf.mxu1 }
 0x351   :  { %v460_v58 = vmax.f32 %v450_v53, 0.0  ;;  %v442_v59 = vadd.f32 %v441_v55, %v343_v44 }
 0x353   :  { %v464_v62 = vpack.c.bf16 %v460_v58, %v459_v57  ;;  %v458_v63 = vmax.f32 %v442_v59, 0.0  ;;  %v535_v51 = vpop.permute.xlu0 %534 }
 0x355   :  { %v463_v4 = vpack.c.bf16 %v458_v63, %v457_v61  ;;  %1288 = vmatprep.subr.bf16.mxu0 %v464_v62 }
 0x356   :  { %1289 = vmatpush3.bf16.msra.mxu0 %v464_v62 }
 0x357   :  { %1290 = vmatprep.subr.bf16.mxu0 %v463_v4  ;;  %v525_v62 = vpop.permute.xlu0 %524 }
 0x35a   :  { %1291 = vmatpush3.bf16.msra.mxu0 %v463_v4 }
 0x35b   :  { %1292 = vmatprep.subr.bf16.mxu0 %v462_v8  ;;  %v515_v9 = vpop.permute.xlu0 %514 }
 0x35e   :  { %1293 = vmatpush3.bf16.msra.mxu0 %v462_v8 }
 0x35f   :  { %1294 = vmatprep.subr.bf16.mxu0 %v461_v11 }
 0x362   :  { %1295 = vmatpush3.bf16.msra.mxu0 %v461_v11 }
 0x365   :  { %1297 = vmatmul.mubr.msk.bf16.vlgmr.msra.gmra.mxu0 %vm617_vm5, %v1375_v12  ;;  %v510_v12 = vpop.permute.xlu1 %509 }
 0x366   :  { %1300 = vmatprep.mubr.msk.bf16.mxu0 %vm617_vm5, %v1376_v13 }
 0x36d   :  { %1301 = vmatmul.mubr.msk.bf16.gmra.mxu0 %vm617_vm5, %v1377_v14 }
 0x36e   :  { %1304 = vmatprep.mubr.msk.bf16.mxu0 %vm617_vm5, %v1378_v15 }
 0x375   :  { %1305 = vmatmul.mubr.msk.bf16.gmra.mxu0 %vm617_vm5, %v1379_v16 }
 0x376   :  { %1308 = vmatprep.mubr.msk.bf16.mxu0 %vm617_vm5, %v1380_v17 }
 0x37d   :  { %1309 = vmatmul.mubr.msk.bf16.gmra.mxu0 %vm617_vm5, %v1381_v18  ;;  %v505_v18 = vpop.permute.xlu0 %504 }
 0x425   :  { %v1724_v20 = vpop.f32.mrf.mxu0 }
 0x426   :  { %v685_v16 = vadd.f32 %v1724_v20, %v510_v12  ;;  %v1383_v20 = vld [vmem:[%s1785_s6 + $0x8] sm:$0xff]  }
 0x427   :  { %v1726_v21 = vpop.f32.mrf.mxu0 }
 0x429   :  { %v1299_v22 = vpop.f32.mrf.mxu0 }
 0x42a   :  { %v688_v13 = vadd.f32 %v1299_v22, %v515_v9 }
 0x42b   :  { %v1728_v23 = vpop.f32.mrf.mxu0 }
 0x42c   :  { %v742_v19 = vmax.f32 %v688_v13, 0.0 }
 0x42d   :  { %v1302_v25 = vpop.f32.mrf.mxu0 }
 0x42e   :  { %v701_v4 = vadd.f32 %v1302_v25, %v530_v56 }
 0x42f   :  { %v692_v27 = vpop.f32.mrf.mxu0 }
 0x430   :  { %v745_v10 = vmax.f32 %v701_v4, 0.0  ;;  %v693_v11 = vadd.f32 %v692_v27, %v520_v3 }
 0x431   :  { %v1303_v28 = vpop.f32.mrf.mxu0 }
 0x432   :  { %v704_v63 = vadd.f32 %v1303_v28, %v535_v51  ;;  %v743_v17 = vmax.f32 %v693_v11, 0.0  ;;  %v741_v28 = vmax.f32 %v685_v16, 0.0 }
 0x433   :  { %v695_v30 = vpop.f32.mrf.mxu0 }
 0x434   :  { %v746_v6 = vmax.f32 %v704_v63, 0.0  ;;  %v696_v7 = vadd.f32 %v695_v30, %v525_v62 }
 0x435   :  { %v1306_v32 = vpop.f32.mrf.mxu0 }
 0x436   :  { %v717_v52 = vadd.f32 %v1306_v32, %v550_v36  ;;  %v758_v14 = vpack.c.bf16 %v746_v6, %v745_v10  ;;  %v744_v15 = vmax.f32 %v696_v7, 0.0  ;;  %v1386_v32 = vld [vmem:[%s1786_s7] sm:$0xff]   ;;  %v1387_v6 = vld [vmem:[%s1786_s7 + $0x8] sm:$0xff]  }
 0x437   :  { %v708_v33 = vpop.f32.mrf.mxu0  ;;  %1344 = vmatprep.mubr.msk.bf16.mxu0 %vm617_vm5, %v1386_v32 }
 0x438   :  { %v749_v60 = vmax.f32 %v717_v52, 0.0  ;;  %v709_v61 = vadd.f32 %v708_v33, %v540_v42  ;;  %v757_v25 = vpack.c.bf16 %v744_v15, %v743_v17  ;;  %v817_v33 = vpop.permute.xlu0 %816 }
 0x439   :  { %v1307_v35 = vpop.f32.mrf.mxu0 }
 0x43a   :  { %v720_v47 = vadd.f32 %v1307_v35, %v555_v34  ;;  %v747_v5 = vmax.f32 %v709_v61, 0.0 }
 0x43b   :  { %v711_v37 = vpop.f32.mrf.mxu0 }
 0x43c   :  { %v750_v57 = vmax.f32 %v720_v47, 0.0  ;;  %v712_v58 = vadd.f32 %v711_v37, %v545_v39 }
 0x43d   :  { %v1310_v38 = vpop.f32.mrf.mxu0 }
 0x43e   :  { %v733_v41 = vadd.f32 %v1310_v38, %v570_v26  ;;  %v760_v0 = vpack.c.bf16 %v750_v57, %v749_v60  ;;  %v748_v1 = vmax.f32 %v712_v58, 0.0  ;;  %v500_v26 = vpop.permute.xlu1 %499  ;;  %v807_v38 = vpop.permute.xlu0 %806 }
 0x43f   :  { %v724_v40 = vpop.f32.mrf.mxu0  ;;  %v677_v27 = vadd.f32 %v1726_v21, %v500_v26  ;;  %v1385_v21 = vld [vmem:[%s1785_s6 + $0x18] sm:$0xff]  }
 0x440   :  { %v725_v44 = vadd.f32 %v724_v40, %v560_v31  ;;  %v753_v48 = vmax.f32 %v733_v41, 0.0  ;;  %v759_v8 = vpack.c.bf16 %v748_v1, %v747_v5 }
 0x441   :  { %v1311_v43 = vpop.f32.mrf.mxu0  ;;  %v739_v30 = vmax.f32 %v677_v27, 0.0 }
 0x442   :  { %v736_v45 = vadd.f32 %v1311_v43, %v575_v24  ;;  %v751_v53 = vmax.f32 %v725_v44, 0.0  ;;  %v680_v24 = vadd.f32 %v1728_v23, %v505_v18  ;;  %v1384_v23 = vld [vmem:[%s1785_s6 + $0x10] sm:$0xff]   ;;  %v812_v35 = vpop.permute.xlu1 %811  ;;  %v797_v44 = vpop.permute.xlu0 %796 }
 0x443   :  { %v727_v46 = vpop.f32.mrf.mxu0 }
 0x444   :  { %v754_v49 = vmax.f32 %v736_v45, 0.0  ;;  %v728_v50 = vadd.f32 %v727_v46, %v565_v29  ;;  %v756_v29 = vpack.c.bf16 %v742_v19, %v741_v28  ;;  %v740_v22 = vmax.f32 %v680_v24, 0.0 }
 0x446   :  { %v762_v54 = vpack.c.bf16 %v754_v49, %v753_v48  ;;  %v752_v55 = vmax.f32 %v728_v50, 0.0  ;;  %v755_v31 = vpack.c.bf16 %v740_v22, %v739_v30  ;;  %v802_v40 = vpop.permute.xlu1 %801  ;;  %v787_v58 = vpop.permute.xlu0 %786 }
 0x448   :  { %v761_v59 = vpack.c.bf16 %v752_v55, %v751_v53  ;;  %1312 = vmatprep.subr.bf16.mxu1 %v762_v54 }
 0x449   :  { %1313 = vmatpush3.bf16.msra.mxu1 %v762_v54 }
 0x44a   :  { %1314 = vmatprep.subr.bf16.mxu1 %v761_v59  ;;  %v792_v48 = vpop.permute.xlu1 %791  ;;  %v946_v7 = vpop.permute.xlu0 %945 }
 0x44d   :  { %1315 = vmatpush3.bf16.msra.mxu1 %v761_v59 }
 0x44e   :  { %1316 = vmatprep.subr.bf16.mxu1 %v760_v0  ;;  %v782_v62 = vpop.permute.xlu1 %781  ;;  %v936_v13 = vpop.permute.xlu0 %935 }
 0x451   :  { %1317 = vmatpush3.bf16.msra.mxu1 %v760_v0 }
 0x452   :  { %1318 = vmatprep.subr.bf16.mxu1 %v759_v8 }
 0x455   :  { %1319 = vmatpush3.bf16.msra.mxu1 %v759_v8  ;;  %v941_v8 = vpop.permute.xlu1 %940 }
 0x456   :  { %1320 = vmatprep.subr.bf16.mxu1 %v758_v14 }
 0x459   :  { %1321 = vmatpush3.bf16.msra.mxu1 %v758_v14  ;;  %v931_v15 = vpop.permute.xlu1 %930 }
 0x45a   :  { %1322 = vmatprep.subr.bf16.mxu1 %v757_v25 }
 0x45d   :  { %1323 = vmatpush3.bf16.msra.mxu1 %v757_v25  ;;  %v1026_v30 = vpop.permute.xlu1 %1025 }
 0x45e   :  { %1324 = vmatprep.subr.bf16.mxu1 %v756_v29 }
 0x461   :  { %1325 = vmatpush3.bf16.msra.mxu1 %v756_v29  ;;  %v1388_v29 = vld [vmem:[%s1787_s8] sm:$0xff]  }
 0x462   :  { %1326 = vmatprep.subr.bf16.mxu1 %v755_v31 }
 0x465   :  { %1327 = vmatpush3.bf16.msra.mxu1 %v755_v31 }
 0x466   :  { %1348 = vmatprep.subr.bf16.mxu1 %v1390_v2 }
 0x468   :  { %1329 = vmatmul.mubr.bf16.vlgmr.msra.gmra.mxu1 %v1383_v20 }
 0x469   :  { %1332 = vmatprep.mubr.bf16.mxu1 %v1384_v23  ;;  %v1031_v23 = vpop.permute.xlu0 %1030 }
 0x470   :  { %1333 = vmatmul.mubr.bf16.gmra.mxu1 %v1385_v21 }
 0x471   :  { %1352 = vmatprep.mubr.msk.bf16.mxu1 %vm1391_vm1, %v1390_v2 }
 0x528   :  { %v1330_v34 = vpop.f32.mrf.mxu1 }
 0x529   :  { %v886_v54 = vadd.f32 %v1330_v34, %v792_v48 }
 0x52a   :  { %v877_v36 = vpop.f32.mrf.mxu1 }
 0x52b   :  { %v910_v63 = vmax.f32 %v886_v54, 0.0  ;;  %v878_v0 = vadd.f32 %v877_v36, %v782_v62 }
 0x52c   :  { %v1331_v37 = vpop.f32.mrf.mxu1 }
 0x52d   :  { %v889_v50 = vadd.f32 %v1331_v37, %v797_v44  ;;  %v908_v4 = vmax.f32 %v878_v0, 0.0  ;;  %v1090_v37 = vpop.permute.xlu1 %1089 }
 0x52e   :  { %v880_v39 = vpop.f32.mrf.mxu1 }
 0x52f   :  { %v911_v59 = vmax.f32 %v889_v50, 0.0  ;;  %v881_v60 = vadd.f32 %v880_v39, %v787_v58 }
 0x530   :  { %v1334_v41 = vpop.f32.mrf.mxu1 }
 0x531   :  { %v902_v43 = vadd.f32 %v1334_v41, %v812_v35  ;;  %v917_v1 = vpack.c.bf16 %v911_v59, %v910_v63  ;;  %v909_v3 = vmax.f32 %v881_v60, 0.0 }
 0x532   :  { %v893_v42 = vpop.f32.mrf.mxu1 }
 0x533   :  { %v894_v46 = vadd.f32 %v893_v42, %v802_v40  ;;  %v914_v51 = vmax.f32 %v902_v43, 0.0  ;;  %v916_v5 = vpack.c.bf16 %v909_v3, %v908_v4 }
 0x534   :  { %v1335_v45 = vpop.f32.mrf.mxu1 }
 0x535   :  { %v905_v47 = vadd.f32 %v1335_v45, %v817_v33  ;;  %v912_v55 = vmax.f32 %v894_v46, 0.0  ;;  %v1143_v46 = vpop.permute.xlu0 %1142 }
 0x536   :  { %v896_v49 = vpop.f32.mrf.mxu1 }
 0x537   :  { %v915_v52 = vmax.f32 %v905_v47, 0.0  ;;  %v897_v53 = vadd.f32 %v896_v49, %v807_v38  ;;  %v1158_v47 = vlaneseq }
 0x539   :  { %v919_v56 = vpack.c.bf16 %v915_v52, %v914_v51  ;;  %v913_v57 = vmax.f32 %v897_v53, 0.0  ;;  %v1159_v50 = vshrl.u32 %v1158_v47, 7 }
 0x53b   :  { %v918_v61 = vpack.c.bf16 %v913_v57, %v912_v55  ;;  %1336 = vmatprep.subr.bf16.mxu0 %v919_v56  ;;  %v1160_v53 = vsub.s32 0, %v1159_v50  ;;  %v1156_v55 = vpop.permute.xlu1 %1155 }
 0x53c   :  { %1337 = vmatpush3.bf16.msra.mxu0 %v919_v56 }
 0x53d   :  { %1338 = vmatprep.subr.bf16.mxu0 %v918_v61  ;;  %v1161_v57 = vrot.slane %v1156_v55, %v1160_v53 }
 0x540   :  { %1339 = vmatpush3.bf16.msra.mxu0 %v918_v61 }
 0x541   :  { %1340 = vmatprep.subr.bf16.mxu0 %v917_v1 }
 0x544   :  { %1341 = vmatpush3.bf16.msra.mxu0 %v917_v1 }
 0x545   :  { %1342 = vmatprep.subr.bf16.mxu0 %v916_v5 }
 0x548   :  { %1343 = vmatpush3.bf16.msra.mxu0 %v916_v5 }
 0x549   :  { %1356 = vmatprep.subr.bf16.mxu0 %v1390_v2 }
 0x54b   :  { %1345 = vmatmul.mubr.msk.bf16.vlgmr.msra.gmra.mxu0 %vm617_vm5, %v1387_v6 }
 0x54c   :  { %1358 = vmatprep.mubr.msk.bf16.mxu0 %vm1391_vm1, %v1390_v2 }
 0x60b   :  { %v1346_v9 = vpop.f32.mrf.mxu0 }
 0x60c   :  { %v1007_v11 = vadd.f32 %v1346_v9, %v941_v8 }
 0x60d   :  { %v998_v10 = vpop.f32.mrf.mxu0 }
 0x60e   :  { %v1015_v17 = vmax.f32 %v1007_v11, 0.0  ;;  %v999_v18 = vadd.f32 %v998_v10, %v931_v15 }
 0x60f   :  { %v1347_v12 = vpop.f32.mrf.mxu0 }
 0x610   :  { %v1010_v14 = vadd.f32 %v1347_v12, %v946_v7  ;;  %v1013_v28 = vmax.f32 %v999_v18, 0.0 }
 0x611   :  { %v1001_v16 = vpop.f32.mrf.mxu0 }
 0x612   :  { %v1016_v19 = vmax.f32 %v1010_v14, 0.0  ;;  %v1002_v24 = vadd.f32 %v1001_v16, %v936_v13 }
 0x614   :  { %v1018_v25 = vpack.c.bf16 %v1016_v19, %v1015_v17  ;;  %v1014_v26 = vmax.f32 %v1002_v24, 0.0 }
 0x616   :  { %1349 = vmatpush3.bf16.msra.mxu1 %v1018_v25  ;;  %v1017_v27 = vpack.c.bf16 %v1014_v26, %v1013_v28 }
 0x617   :  { %1350 = vmatprep.subr.bf16.mxu1 %v1390_v2  ;;  %v1085_v2 = vld [vmem:[%s1788_s9] sm:$0xf] }
 0x61a   :  { %1351 = vmatpush3.bf16.msra.mxu1 %v1017_v27 }
 0x61d   :  { %1353 = vmatmul.mubr.msk.bf16.vlgmr.msra.gmra.mxu1 %vm375_vm4, %v1388_v29 }
 0x6dd   :  { %v1075_v22 = vpop.f32.mrf.mxu1 }
 0x6de   :  { %v1076_v20 = vadd.f32 %v1075_v22, %v1026_v30 }
 0x6df   :  { %v1354_v31 = vpop.f32.mrf.mxu1 }
 0x6e0   :  { %v1082_v34 = vmax.f32 %v1076_v20, 0.0 }
 0x6e1   :  { %v1078_v21 = vpop.f32.mrf.mxu1 }
 0x6e2   :  { %v1079_v32 = vadd.f32 %v1078_v21, %v1031_v23 }
 0x6e3   :  { %v1355_v33 = vpop.f32.mrf.mxu1 }
 0x6e4   :  { %v1083_v35 = vmax.f32 %v1079_v32, 0.0 }
 0x6e6   :  { %v1084_v36 = vpack.c.bf16 %v1083_v35, %v1082_v34 }
 0x6e8   :  { %1357 = vmatpush3.bf16.msra.mxu0 %v1084_v36 }
 0x6eb   :  { %1359 = vmatmul.mubr.msk.bf16.vlgmr.msra.gmra.mxu0 %vm237_vm3, %v1085_v2 }
 0x7ab   :  { %v1129_v38 = vpop.f32.mrf.mxu0 }
 0x7ac   :  { %v1130_v39 = vadd.f32 %v1129_v38, %v1090_v37 }
 0x7ad   :  { %v1360_v40 = vpop.f32.mrf.mxu0 }
 0x7ae   :  { %v1135_v41 = vmax.f32 %v1130_v39, 0.0 }
 0x7af   :  { %v1132_v42 = vpop.f32.mrf.mxu0 }
 0x7b0   :  { %v1136_v43 = vpack.c.bf16 %v1135_v41, %v1135_v41 }
 0x7b1   :  { %v1361_v44 = vpop.f32.mrf.mxu0 }
 0x7b2   :  { %v1139_v45 = vunpack.c.l.bf16 %v1136_v43 }
 0x7b4   :  { %v1145_v48 = vmul.f32 %v1143_v46, %v1139_v45 }
 0x7b6   :  { %v1146_v49 = vrot.slane %v1145_v48, 4 }
 0x7b8   :  { %v1147_v51 = vadd.f32 %v1146_v49, %v1145_v48 }
 0x7ba   :  { %v1148_v52 = vrot.slane %v1147_v51, 2 }
 0x7bc   :  { %v1149_v54 = vadd.f32 %v1148_v52, %v1147_v51 }
 0x7be   :  { %v1150_v56 = vrot.slane %v1149_v54, 1 }
 0x7c0   :  { %v1151_v58 = vadd.f32 %v1150_v56, %v1149_v54 }
 0x7c2   :  { %v1162_v59 = vadd.f32 %v1161_v57, %v1151_v58 }
 0x7c4   :  { %1163 = vst [vmem:[%s1789_s21] sm:$0x1] %v1162_v59 }

</bundles_post_ra>
